<compile_context>
chip_gen: v7x
topology: tpu7x:2x2x1
jax: 0.10.0
libtpu: 0.0.40
codegen_flags: <defaults>
</compile_context>

<pallas_src>
import functools
import math

import jax
import jax.numpy as jnp
from jax.experimental import pallas as pl
from jax.experimental.pallas import tpu as pltpu


# Abramowitz & Stegun 4.4.46:  acos(x) = sqrt(1-x) * P(x) for 0 <= x <= 1,
# |error| <= 2e-8;  acos(-x) = pi - acos(x).  Horner coefficients, high->low.
_ACOS_COEFFS = (
    -0.0012624911,
    0.0066700901,
    -0.0170881256,
    0.0308918810,
    -0.0501743046,
    0.0889789874,
    -0.2145988016,
    1.5707963050,
)

_DOT_DIMS = (((1,), (0,)), ((), ()))


def _acos_poly(c):
    """Elementwise arccos (VPU/EUP only; no transcendental-lib dependency)."""
    c = jnp.clip(c, -1.0, 1.0)          # guard cos > 1 by a few ulps -> NaN
    a = jnp.abs(c)
    p = jnp.float32(_ACOS_COEFFS[0])
    for coef in _ACOS_COEFFS[1:]:
        p = p * a + jnp.float32(coef)
    acos_abs = jnp.sqrt(jnp.maximum(1.0 - a, 0.0)) * p
    return jnp.where(c < 0.0, jnp.float32(math.pi) - acos_abs, acos_abs)


def _mxu_rowsum(p, ones_col):
    """Row-sum of an f32 (tb, nb) tile as an MXU matvec against a ones column.

    The f32 products are split into bf16 hi/lo parts so two single-pass bf16
    matmuls (f32 accumulation) reproduce the f32 sum to ~1e-5 relative while
    keeping the MXU push count at ~2*tb/8 per reduction.  This moves the
    reduction off the XLU, which otherwise becomes the binding slot at large
    tiles (the MXU is completely idle in this kernel).
    """
    p_hi = p.astype(jnp.bfloat16)
    p_lo = (p - p_hi.astype(jnp.float32)).astype(jnp.bfloat16)
    s = jax.lax.dot_general(p_hi, ones_col, _DOT_DIMS,
                            preferred_element_type=jnp.float32)
    s = s + jax.lax.dot_general(p_lo, ones_col, _DOT_DIMS,
                                preferred_element_type=jnp.float32)
    # (tb, 1) sublane-major -> (tb,) lane-major.  This relayout rides the
    # otherwise-idle store/XLU slots now that the reductions live on the MXU.
    return s[:, 0]


def _sad_kernel(x_ref, t_ref, ang_ref):
    """Per-row <x,x>, <t,t>, <x,t> on the MXU -> acos of normalized product."""
    x = x_ref[...].astype(jnp.float32)            # (tb, num_bands)
    t = t_ref[...].astype(jnp.float32)
    nb = x.shape[-1]
    ones_col = jnp.ones((nb, 1), dtype=jnp.bfloat16)

    s_xx = _mxu_rowsum(x * x, ones_col)           # (tb,)
    s_tt = _mxu_rowsum(t * t, ones_col)           # (tb,)
    s_xt = _mxu_rowsum(x * t, ones_col)           # (tb,)

    # cos(angle) = <x,t> / (|x| |t|).  Two EUP rsqrt (no s_xx*s_tt product, so
    # large-magnitude spectra cannot overflow float32).  Zero rows -> NaN, same
    # as the reference's 0/0.
    cos = s_xt * jax.lax.rsqrt(s_xx) * jax.lax.rsqrt(s_tt)
    ang = _acos_poly(cos)
    # Lane-dense store: (tb,) -> (1, 1, tb) output block (unmasked vst).
    ang_ref[...] = ang[None, None, :]


def _round_up(x, m):
    return ((x + m - 1) // m) * m


def _cdiv(a, b):
    return (a + b - 1) // b


def _tpu_vmem_bytes():
    """Best-effort per-TensorCore VMEM capacity; falls back to 128 MiB."""
    try:
        return int(pltpu.get_tpu_info().vmem_capacity_bytes)
    except Exception:
        return 128 * 1024 * 1024


def _choose_tiling(rows, num_bands, itemsize):
    """Pick (batch_tile, grid, vmem_limit_bytes) from the VMEM budget."""
    vmem_cap = _tpu_vmem_bytes()
    # 64 MiB/TensorCore is the v7x-class signature (2 TCs/chip); 128 MiB parts
    # (v5e/v6e) are single-TC and can take much larger scoped VMEM limits.
    two_cores = vmem_cap <= 64 * 1024 * 1024
    if two_cores:
        in_budget = 24 * 1024 * 1024      # double-buffered inputs
        vmem_limit = 56 * 1024 * 1024     # stay under the 64 MiB physical cap
    else:
        in_budget = 48 * 1024 * 1024
        vmem_limit = 96 * 1024 * 1024

    # Lane-padded accounting: a (tb, 103) f32 row really occupies 128 lanes.
    lane_bands = _round_up(num_bands, 128)
    bytes_per_row = 2 * 2 * lane_bands * itemsize   # 2 inputs x 2 pipeline bufs
    tb = min(16384, max(8, (in_budget // bytes_per_row) // 8 * 8))
    tb = min(tb, _round_up(rows, 8))

    # Megacore balance: only on 2-TC parts force >= 2 equal(ish) steps, and
    # keep the step count even so both cores get the same work.
    if two_cores and rows > 8:
        steps = _cdiv(rows, tb)
        if steps < 2:
            steps = 2
        elif steps % 2:
            steps += 1
        tb = max(8, _round_up(_cdiv(rows, steps), 8))

    grid = _cdiv(rows, tb)
    return tb, grid, vmem_limit


@functools.partial(jax.jit, static_argnums=2)
def sad(input_arr: jax.Array, target_arr: jax.Array, num_bands: int) -> jax.Array:
    """Spectral Angle Distance.

    Args:
      input_arr:  (batch, num_bands)
      target_arr: (batch, num_bands)
    Returns:
      angle: (batch, 1, 1) float32 -- acos of the normalized inner product,
             identical semantics to the PyTorch bmm-based reference.
    """
    x = input_arr.reshape(-1, num_bands)
    t = target_arr.reshape(-1, num_bands)
    b = x.shape[0]

    # Only tiny batches (< one sublane group) get padded; ragged batches use
    # Pallas partial-block handling instead of a full-array jnp.pad copy.
    if b < 8:
        x = jnp.pad(x, ((0, 8 - b), (0, 0)))
        t = jnp.pad(t, ((0, 8 - b), (0, 0)))
    rows = max(b, 8)

    itemsize = jnp.dtype(x.dtype).itemsize
    tb, grid, vmem_limit = _choose_tiling(rows, num_bands, itemsize)

    # TODO(synk): if an xprof trace on v7x still shows exposed DMA at step
    # boundaries, add pipeline_mode=pl.Buffered(3) to the two input BlockSpecs
    # (fits the 56 MiB budget at tb <= 12288).
    ang = pl.pallas_call(
        _sad_kernel,
        out_shape=jax.ShapeDtypeStruct((grid, 1, tb), jnp.float32),
        grid_spec=pltpu.PrefetchScalarGridSpec(
            num_scalar_prefetch=0,
            grid=(grid,),
            in_specs=[
                pl.BlockSpec((tb, num_bands), lambda i: (i, 0)),
                pl.BlockSpec((tb, num_bands), lambda i: (i, 0)),
            ],
            out_specs=pl.BlockSpec((1, 1, tb), lambda i: (i, 0, 0)),
        ),
        compiler_params=pltpu.CompilerParams(
            dimension_semantics=("parallel",),
            vmem_limit_bytes=vmem_limit,
        ),
    )(x, t)

    # Drop padded / out-of-bounds rows (garbage there) and match torch.bmm's
    # (batch, 1, 1) output shape.
    return ang.reshape(-1)[:b].reshape(-1, 1, 1)


def _reference(inp, tgt):
    dot = jnp.sum(inp.astype(jnp.float32) * tgt.astype(jnp.float32), axis=-1)
    denom = (jnp.linalg.norm(inp.astype(jnp.float32), axis=-1)
             * jnp.linalg.norm(tgt.astype(jnp.float32), axis=-1))
    return jnp.arccos(dot / denom).reshape(-1, 1, 1)


if __name__ == "__main__":
    num_bands = 103
    batch = 16

    key = jax.random.PRNGKey(0)
    k1, k2, k3, k4 = jax.random.split(key, 4)
    # Positive spectra (like hyperspectral reflectances) keep cos in (0, 1].
    inp = jax.random.uniform(k1, (batch, num_bands), dtype=jnp.float32,
                             minval=0.05, maxval=1.0)
    tgt = jax.random.uniform(k2, (batch, num_bands), dtype=jnp.float32,
                             minval=0.05, maxval=1.0)

    angle = jax.block_until_ready(sad(inp, tgt, num_bands))
    ref = _reference(inp, tgt)
    assert angle.shape == (batch, 1, 1)
    # 1e-4 absolute on ~0.6 rad angles: covers the bf16 hi/lo MXU reduction
    # (~1e-5 rel) and the A&S acos polynomial (~2e-8).
    assert jnp.allclose(angle, ref, atol=1e-4), (angle.ravel(), ref.ravel())

    # Ragged batch (not a multiple of 8) to exercise the partial-block path.
    rb = 13
    inp_r = jax.random.uniform(k3, (rb, num_bands), dtype=jnp.float32,
                               minval=0.05, maxval=1.0)
    tgt_r = jax.random.uniform(k4, (rb, num_bands), dtype=jnp.float32,
                               minval=0.05, maxval=1.0)
    angle_r = jax.block_until_ready(sad(inp_r, tgt_r, num_bands))
    ref_r = _reference(inp_r, tgt_r)
    assert angle_r.shape == (rb, 1, 1)
    assert jnp.allclose(angle_r, ref_r, atol=1e-4), (angle_r.ravel(), ref_r.ravel())

    print("KERNEL_OK")
</pallas_src>

<mosaic_0001>
module attributes {stable_mosaic.version = 11 : i64} {
  func.func @_sad_kernel(%arg0: i32, %arg1: memref<16x103xf32, #tpu.memory_space<vmem>>, %arg2: memref<16x103xf32, #tpu.memory_space<vmem>>, %arg3: memref<1x1x16xf32, #tpu.memory_space<vmem>>) attributes {dimension_semantics = [#tpu.dimension_semantics<parallel>], iteration_bounds = array<i64: 1>, scalar_prefetch = 0 : i64, scratch_operands = 0 : i64, tpu.core_type = #tpu.core_type<tc>, window_params = [{transform_indices = @transform_0, window_bounds = array<i64: 16, 103>}, {transform_indices = @transform_1, window_bounds = array<i64: 16, 103>}, {transform_indices = @transform_2, window_bounds = array<i64: 1, 1, 16>}]} {
    %c0 = arith.constant 0 : index
    %c0_0 = arith.constant 0 : index
    %0 = vector.load %arg1[%c0, %c0_0] : memref<16x103xf32, #tpu.memory_space<vmem>>, vector<16x103xf32>
    %c0_1 = arith.constant 0 : index
    %c0_2 = arith.constant 0 : index
    %1 = vector.load %arg2[%c0_1, %c0_2] : memref<16x103xf32, #tpu.memory_space<vmem>>, vector<16x103xf32>
    %cst = arith.constant 1.000000e+00 : bf16
    %2 = vector.broadcast %cst : bf16 to vector<103x1xbf16>
    %3 = arith.mulf %0, %0 : vector<16x103xf32>
    %4 = arith.truncf %3 : vector<16x103xf32> to vector<16x103xbf16>
    %5 = arith.extf %4 : vector<16x103xbf16> to vector<16x103xf32>
    %6 = arith.subf %3, %5 : vector<16x103xf32>
    %7 = arith.truncf %6 : vector<16x103xf32> to vector<16x103xbf16>
    %cst_3 = arith.constant dense<0.000000e+00> : vector<16x1xf32>
    %8 = tpu.matmul %4, %2, %cst_3 {dimension_numbers = #tpu.dot_dimension_numbers<[1], [0], [0], [1], [0, 0, 1, 1], [], []>} : vector<16x103xbf16>, vector<103x1xbf16>, vector<16x1xf32> -> vector<16x1xf32>
    %cst_4 = arith.constant dense<0.000000e+00> : vector<16x1xf32>
    %9 = tpu.matmul %7, %2, %cst_4 {dimension_numbers = #tpu.dot_dimension_numbers<[1], [0], [0], [1], [0, 0, 1, 1], [], []>} : vector<16x103xbf16>, vector<103x1xbf16>, vector<16x1xf32> -> vector<16x1xf32>
    %10 = arith.addf %8, %9 : vector<16x1xf32>
    %11 = vector.shape_cast %10 : vector<16x1xf32> to vector<16xf32>
    %12 = arith.mulf %1, %1 : vector<16x103xf32>
    %13 = arith.truncf %12 : vector<16x103xf32> to vector<16x103xbf16>
    %14 = arith.extf %13 : vector<16x103xbf16> to vector<16x103xf32>
    %15 = arith.subf %12, %14 : vector<16x103xf32>
    %16 = arith.truncf %15 : vector<16x103xf32> to vector<16x103xbf16>
    %cst_5 = arith.constant dense<0.000000e+00> : vector<16x1xf32>
    %17 = tpu.matmul %13, %2, %cst_5 {dimension_numbers = #tpu.dot_dimension_numbers<[1], [0], [0], [1], [0, 0, 1, 1], [], []>} : vector<16x103xbf16>, vector<103x1xbf16>, vector<16x1xf32> -> vector<16x1xf32>
    %cst_6 = arith.constant dense<0.000000e+00> : vector<16x1xf32>
    %18 = tpu.matmul %16, %2, %cst_6 {dimension_numbers = #tpu.dot_dimension_numbers<[1], [0], [0], [1], [0, 0, 1, 1], [], []>} : vector<16x103xbf16>, vector<103x1xbf16>, vector<16x1xf32> -> vector<16x1xf32>
    %19 = arith.addf %17, %18 : vector<16x1xf32>
    %20 = vector.shape_cast %19 : vector<16x1xf32> to vector<16xf32>
    %21 = arith.mulf %0, %1 : vector<16x103xf32>
    %22 = arith.truncf %21 : vector<16x103xf32> to vector<16x103xbf16>
    %23 = arith.extf %22 : vector<16x103xbf16> to vector<16x103xf32>
    %24 = arith.subf %21, %23 : vector<16x103xf32>
    %25 = arith.truncf %24 : vector<16x103xf32> to vector<16x103xbf16>
    %cst_7 = arith.constant dense<0.000000e+00> : vector<16x1xf32>
    %26 = tpu.matmul %22, %2, %cst_7 {dimension_numbers = #tpu.dot_dimension_numbers<[1], [0], [0], [1], [0, 0, 1, 1], [], []>} : vector<16x103xbf16>, vector<103x1xbf16>, vector<16x1xf32> -> vector<16x1xf32>
    %cst_8 = arith.constant dense<0.000000e+00> : vector<16x1xf32>
    %27 = tpu.matmul %25, %2, %cst_8 {dimension_numbers = #tpu.dot_dimension_numbers<[1], [0], [0], [1], [0, 0, 1, 1], [], []>} : vector<16x103xbf16>, vector<103x1xbf16>, vector<16x1xf32> -> vector<16x1xf32>
    %28 = arith.addf %26, %27 : vector<16x1xf32>
    %29 = vector.shape_cast %28 : vector<16x1xf32> to vector<16xf32>
    %30 = math.rsqrt %11 : vector<16xf32>
    %31 = arith.mulf %29, %30 : vector<16xf32>
    %32 = math.rsqrt %20 : vector<16xf32>
    %33 = arith.mulf %31, %32 : vector<16xf32>
    %cst_9 = arith.constant -1.000000e+00 : f32
    %cst_10 = arith.constant 1.000000e+00 : f32
    %34 = vector.broadcast %cst_9 : f32 to vector<16xf32>
    %35 = arith.maximumf %34, %33 : vector<16xf32>
    %36 = vector.broadcast %cst_10 : f32 to vector<16xf32>
    %37 = arith.minimumf %36, %35 : vector<16xf32>
    %38 = math.absf %37 : vector<16xf32>
    %cst_11 = arith.constant -0.0012624911 : f32
    %39 = vector.broadcast %cst_11 : f32 to vector<16xf32>
    %40 = arith.mulf %39, %38 : vector<16xf32>
    %cst_12 = arith.constant 6.670090e-03 : f32
    %41 = vector.broadcast %cst_12 : f32 to vector<16xf32>
    %42 = arith.addf %40, %41 : vector<16xf32>
    %43 = arith.mulf %42, %38 : vector<16xf32>
    %cst_13 = arith.constant -0.0170881264 : f32
    %44 = vector.broadcast %cst_13 : f32 to vector<16xf32>
    %45 = arith.addf %43, %44 : vector<16xf32>
    %46 = arith.mulf %45, %38 : vector<16xf32>
    %cst_14 = arith.constant 0.0308918804 : f32
    %47 = vector.broadcast %cst_14 : f32 to vector<16xf32>
    %48 = arith.addf %46, %47 : vector<16xf32>
    %49 = arith.mulf %48, %38 : vector<16xf32>
    %cst_15 = arith.constant -0.0501743034 : f32
    %50 = vector.broadcast %cst_15 : f32 to vector<16xf32>
    %51 = arith.addf %49, %50 : vector<16xf32>
    %52 = arith.mulf %51, %38 : vector<16xf32>
    %cst_16 = arith.constant 0.0889789909 : f32
    %53 = vector.broadcast %cst_16 : f32 to vector<16xf32>
    %54 = arith.addf %52, %53 : vector<16xf32>
    %55 = arith.mulf %54, %38 : vector<16xf32>
    %cst_17 = arith.constant -0.214598805 : f32
    %56 = vector.broadcast %cst_17 : f32 to vector<16xf32>
    %57 = arith.addf %55, %56 : vector<16xf32>
    %58 = arith.mulf %57, %38 : vector<16xf32>
    %cst_18 = arith.constant 1.57079625 : f32
    %59 = vector.broadcast %cst_18 : f32 to vector<16xf32>
    %60 = arith.addf %58, %59 : vector<16xf32>
    %cst_19 = arith.constant 1.000000e+00 : f32
    %61 = vector.broadcast %cst_19 : f32 to vector<16xf32>
    %62 = arith.subf %61, %38 : vector<16xf32>
    %cst_20 = arith.constant 0.000000e+00 : f32
    %63 = vector.broadcast %cst_20 : f32 to vector<16xf32>
    %64 = arith.maximumf %62, %63 : vector<16xf32>
    %65 = math.sqrt %64 : vector<16xf32>
    %66 = arith.mulf %65, %60 : vector<16xf32>
    %cst_21 = arith.constant 0.000000e+00 : f32
    %67 = vector.broadcast %cst_21 : f32 to vector<16xf32>
    %68 = arith.cmpf olt, %37, %67 : vector<16xf32>
    %cst_22 = arith.constant 3.14159274 : f32
    %69 = vector.broadcast %cst_22 : f32 to vector<16xf32>
    %70 = arith.subf %69, %66 : vector<16xf32>
    %71 = arith.select %68, %70, %66 : vector<16xi1>, vector<16xf32>
    %72 = vector.shape_cast %71 : vector<16xf32> to vector<1x1x16xf32>
    %c0_23 = arith.constant 0 : index
    %c0_24 = arith.constant 0 : index
    %c0_25 = arith.constant 0 : index
    %73 = vector.load %arg3[%c0_23, %c0_24, %c0_25] : memref<1x1x16xf32, #tpu.memory_space<vmem>>, vector<1x1x16xf32>
    tpu.vector_store %arg3[%c0_23, %c0_24, %c0_25], %72 {strides = array<i32>} : memref<1x1x16xf32, #tpu.memory_space<vmem>>, vector<1x1x16xf32>,
    return
  }
  func.func @transform_0(%arg0: i32) -> (i32, i32) {
    %c0_i32 = arith.constant 0 : i32
    %c0_i32_0 = arith.constant 0 : i32
    return %arg0, %c0_i32 : i32, i32
  }
  func.func @transform_1(%arg0: i32) -> (i32, i32) {
    %c0_i32 = arith.constant 0 : i32
    %c0_i32_0 = arith.constant 0 : i32
    return %arg0, %c0_i32 : i32, i32
  }
  func.func @transform_2(%arg0: i32) -> (i32, i32, i32) {
    %c0_i32 = arith.constant 0 : i32
    %c0_i32_0 = arith.constant 0 : i32
    %c0_i32_1 = arith.constant 0 : i32
    return %arg0, %c0_i32, %c0_i32_0 : i32, i32, i32
  }
}

</mosaic_0001>

<bundles_post_ra>
// kernel: sad.1
= control target key start
LH: loop header
LB: loop body
LE: loop exit
PB: predicated region body
PF: predicated region fallthrough
CT: control target
= control target key end

     0   :  { %7 = vsyncpa [#allocation3], 0  ;;  %s884_s0 = inlined_call_operand.hbm [shape: f32[16,103], index: 0, kind: input, shape index: {}]   ;;  %s885_s1 = inlined_call_operand.hbm [shape: f32[16,103], index: 1, kind: input, shape index: {}]   ;;  %s886_s2 = inlined_call_operand.hbm [shape: f32[1,1,16], index: 2, kind: output, shape index: {}]  }
   0x1   :  { %8 = vsyncpa [#allocation6], 0 }
   0x2   :  { %9 = vsyncpa [#allocation4], 0  ;;  %s719_s9 = smov [#allocation2]   ;;  %s647_s13 = scalar_lea.hbm %s884_s0, 256 }
   0x3   :  { %s15_s10 = sshll.u32 %s719_s9, 4  ;;  %p648_p0 = scmp.ne.s32.totalorder %s884_s0, %s647_s13  ;;  %s16_s10 = int_to_ptr.vmem [resolvable:$true] %s15_s10 }
   0x4   :  { %p651_p1 = scmp.lt.u32.totalorder %s647_s13, %s884_s0 }
   0x6   :  { %p653_p2 = pnand %p651_p1, %p648_p0 }
   0x8   :  { %656 = shalt.err (!%p653_p2)
}
   0x9   :  { %s657_s18 = scalar_lea.vmem %s16_s10, 256  ;;  %p662_p4 = scmp.lt.s32.totalorder %s16_s10, %s16_s10 }
   0xa   :  { %p658_p3 = scmp.ne.s32.totalorder %s16_s10, %s657_s18  ;;  %p663_p5 = scmp.lt.s32.totalorder %s657_s18, %s657_s18 }
   0xc   :  { %p664_p6 = por %p663_p5, %p662_p4 }
   0xe   :  { %p665_p7 = pnand %p664_p6, %p658_p3 }
  0x10   :  { %668 = shalt.err (!%p665_p7)
}
  0x11   :  { %s720_s19 = smov 128   ;;  %s721_s20 = smov 8  }
  0x12   :  { %21 = dma.hbm_to_vmem [thread:$0]  %s884_s0, 256, %s16_s10, [#allocation3], %s720_s19, %s720_s19, %s721_s20  }
  0x13   :  { %s722_s23 = smov [#allocation5]   ;;  %s669_s27 = scalar_lea.hbm %s885_s1, 256 }
  0x14   :  { %s27_s24 = sshll.u32 %s722_s23, 4  ;;  %p670_p8 = scmp.ne.s32.totalorder %s885_s1, %s669_s27  ;;  %s28_s24 = int_to_ptr.vmem [resolvable:$true] %s27_s24 }
  0x15   :  { %p673_p9 = scmp.lt.u32.totalorder %s669_s27, %s885_s1 }
  0x17   :  { %p675_p10 = pnand %p673_p9, %p670_p8 }
  0x19   :  { %678 = shalt.err (!%p675_p10)
}
  0x1a   :  { %s679_s4 = scalar_lea.vmem %s28_s24, 256  ;;  %p684_p12 = scmp.lt.s32.totalorder %s28_s24, %s28_s24 }
  0x1b   :  { %p680_p11 = scmp.ne.s32.totalorder %s28_s24, %s679_s4  ;;  %p685_p13 = scmp.lt.s32.totalorder %s679_s4, %s679_s4 }
  0x1d   :  { %p686_p0 = por %p685_p13, %p684_p12 }
  0x1f   :  { %p687_p1 = pnand %p686_p0, %p680_p11 }
  0x21   :  { %690 = shalt.err (!%p687_p1)
}
  0x22   :  { %33 = dma.hbm_to_vmem [thread:$0]  %s885_s1, 256, %s28_s24, [#allocation6], %s720_s19, %s720_s19, %s721_s20  }
  0x23   :  { %713 = dma.done.wait [#allocation3], 256  }
  0x24   :  { %714 = vsyncadd [#allocation3], 4294967040 }
  0x25   :  { %715 = dma.done.wait [#allocation6], 256  }
  0x26   :  { %716 = vsyncadd [#allocation6], 4294967040  ;;  %v723_v0 = vmov 0.0   ;;  %v724_v1 = vmov 1065369472   ;;  %vm725_vm0 = vmmov 0  }
  0x27   :  { %506 = vmatprep.subr.bf16.mxu1 %v723_v0  ;;  %524 = vmatprep.subr.bf16.mxu0 %v723_v0  ;;  %v42_v2 = vld [vmem:[#allocation2] sm:$0xff]  ;;  %v43_v3 = vld [vmem:[#allocation2 + $0x8] sm:$0xff]  ;;  %vm58_vm1 = vcmask 1042432   ;;  %vm59_vm2 = vcmask 1043456   ;;  %v726_v7 = vmov 65535   ;;  %vm54_vm3 = vcmask 842752  }
  0x28   :  { %507 = vmatpush3.bf16.msra.mxu1 %v724_v1  ;;  %525 = vmatpush3.bf16.msra.mxu0 %v724_v1  ;;  %v46_v4 = vmul.f32 %v42_v2, %v42_v2  ;;  %v47_v5 = vmul.f32 %v43_v3, %v43_v3  ;;  %v60_v8 = vsel %vm58_vm1, 4294967295, %v726_v7  ;;  %v44_v16 = vld [vmem:[#allocation5] sm:$0xff]  ;;  %v45_v17 = vld [vmem:[#allocation5 + $0x8] sm:$0xff]  ;;  %v727_v34 = vmov 0   ;;  %s728_s1 = smov [#allocation7]  }
  0x29   :  { %508 = vmatprep.subr.bf16.mxu1 %v723_v0  ;;  %526 = vmatprep.subr.bf16.mxu0 %v723_v0  ;;  %v61_v11 = vsel %vm59_vm2, %v60_v8, 0  ;;  %v150_v18 = vmul.f32 %v44_v16, %v44_v16  ;;  %v151_v19 = vmul.f32 %v45_v17, %v45_v17  ;;  %v246_v20 = vmul.f32 %v44_v16, %v42_v2  ;;  %s440_s6 = sshll.u32 %s728_s1, 4  ;;  %s441_s6 = int_to_ptr.vmem [resolvable:$true] %s440_s6 }
  0x2a   :  { %520 = vmatprep.mubr.msk.bf16.mxu1 %vm725_vm0, %v723_v0  ;;  %538 = vmatprep.mubr.msk.bf16.mxu0 %vm725_vm0, %v723_v0  ;;  %v48_v6 = vpack.c.bf16 %v47_v5, %v46_v4  ;;  %v796_v14 = vand.u32 1065369472, %v61_v11  ;;  %v247_v21 = vmul.f32 %v45_v17, %v43_v3  ;;  %vm429_vm10 = vcmask 130112   ;;  %s691_s7 = scalar_lea.vmem %s441_s6, 16  ;;  %s695_s8 = scalar_lea.vmem %s441_s6, 32 }
  0x2b   :  { %v152_v22 = vpack.c.bf16 %v151_v19, %v150_v18  ;;  %634 = vset.pattern.permute.xlu0 %v727_v34  ;;  %vm432_vm11 = vcmask 122880   ;;  %p692_p2 = scmp.ne.s32.totalorder %s441_s6, %s691_s7  ;;  %p696_p3 = scmp.lt.s32.totalorder %s441_s6, %s441_s6 }
  0x2c   :  { %509 = vmatpush3.bf16.msra.mxu1 %v724_v1  ;;  %527 = vmatpush3.bf16.msra.mxu0 %v724_v1  ;;  %v49_v9 = vunpack.c.l.bf16 %v48_v6  ;;  %v50_v10 = vunpack.c.h.bf16 %v48_v6  ;;  %v248_v23 = vpack.c.bf16 %v247_v21, %v246_v20  ;;  %p697_p4 = scmp.lt.s32.totalorder %s695_s8, %s691_s7 }
  0x2d   :  { %510 = vmatprep.subr.bf16.mxu1 %v723_v0  ;;  %528 = vmatprep.subr.bf16.mxu0 %v723_v0  ;;  %v153_v24 = vunpack.c.l.bf16 %v152_v22  ;;  %v154_v25 = vunpack.c.h.bf16 %v152_v22 }
  0x2e   :  { %v51_v12 = vsub.f32 %v46_v4, %v49_v9  ;;  %v52_v13 = vsub.f32 %v47_v5, %v50_v10  ;;  %v249_v26 = vunpack.c.l.bf16 %v248_v23  ;;  %v250_v27 = vunpack.c.h.bf16 %v248_v23  ;;  %p698_p5 = por %p697_p4, %p696_p3 }
  0x2f   :  { %v155_v28 = vsub.f32 %v150_v18, %v153_v24  ;;  %v156_v29 = vsub.f32 %v151_v19, %v154_v25 }
  0x30   :  { %511 = vmatpush3.bf16.msra.mxu1 %v724_v1  ;;  %529 = vmatpush3.bf16.msra.mxu0 %v724_v1  ;;  %v53_v15 = vpack.c.bf16 %v52_v13, %v51_v12  ;;  %v251_v30 = vsub.f32 %v246_v20, %v249_v26  ;;  %v252_v31 = vsub.f32 %v247_v21, %v250_v27  ;;  %p699_p6 = pnand %p698_p5, %p692_p2 }
  0x31   :  { %512 = vmatprep.subr.bf16.mxu1 %v723_v0  ;;  %530 = vmatprep.subr.bf16.mxu0 %v723_v0  ;;  %v157_v32 = vpack.c.bf16 %v156_v29, %v155_v28 }
  0x32   :  { %v253_v33 = vpack.c.bf16 %v252_v31, %v251_v30 }
  0x34   :  { %513 = vmatpush3.bf16.msra.mxu1 %v724_v1  ;;  %531 = vmatpush3.bf16.msra.mxu0 %v724_v1 }
  0x35   :  { %514 = vmatprep.subr.bf16.mxu1 %v723_v0  ;;  %532 = vmatprep.subr.bf16.mxu0 %v723_v0 }
  0x38   :  { %515 = vmatpush3.bf16.msra.mxu1 %v724_v1  ;;  %533 = vmatpush3.bf16.msra.mxu0 %v724_v1 }
  0x39   :  { %516 = vmatprep.subr.bf16.mxu1 %v723_v0  ;;  %534 = vmatprep.subr.bf16.mxu0 %v723_v0 }
  0x3c   :  { %517 = vmatpush3.bf16.msra.mxu1 %v724_v1  ;;  %535 = vmatpush3.bf16.msra.mxu0 %v724_v1 }
  0x3d   :  { %518 = vmatprep.subr.bf16.mxu1 %v723_v0  ;;  %536 = vmatprep.subr.bf16.mxu0 %v723_v0 }
  0x40   :  { %519 = vmatpush3.bf16.msra.mxu1 %v796_v14  ;;  %537 = vmatpush3.bf16.msra.mxu0 %v796_v14 }
  0x41   :  { %542 = vmatprep.subr.bf16.mxu1 %v723_v0  ;;  %578 = vmatprep.subr.bf16.mxu0 %v723_v0 }
  0x43   :  { %521 = vmatmul.mubr.msk.bf16.vlgmr.msra.gmra.mrb[0].mxu1 %vm54_vm3, %v53_v15  ;;  %539 = vmatmul.mubr.msk.bf16.vlgmr.msra.gmra.mrb[0].mxu0 %vm54_vm3, %v48_v6 }
  0x44   :  { %543 = vmatpush3.bf16.msra.mxu1 %v724_v1  ;;  %579 = vmatpush3.bf16.msra.mxu0 %v724_v1 }
  0x45   :  { %544 = vmatprep.subr.bf16.mxu1 %v723_v0  ;;  %580 = vmatprep.subr.bf16.mxu0 %v723_v0 }
  0x46   :  { %556 = vmatprep.mubr.msk.bf16.mxu1 %vm725_vm0, %v723_v0  ;;  %592 = vmatprep.mubr.msk.bf16.mxu0 %vm725_vm0, %v723_v0 }
  0x48   :  { %545 = vmatpush3.bf16.msra.mxu1 %v724_v1  ;;  %581 = vmatpush3.bf16.msra.mxu0 %v724_v1 }
  0x49   :  { %546 = vmatprep.subr.bf16.mxu1 %v723_v0  ;;  %582 = vmatprep.subr.bf16.mxu0 %v723_v0 }
  0x4c   :  { %547 = vmatpush3.bf16.msra.mxu1 %v724_v1  ;;  %583 = vmatpush3.bf16.msra.mxu0 %v724_v1 }
  0x4d   :  { %548 = vmatprep.subr.bf16.mxu1 %v723_v0  ;;  %584 = vmatprep.subr.bf16.mxu0 %v723_v0 }
  0x50   :  { %549 = vmatpush3.bf16.msra.mxu1 %v724_v1  ;;  %585 = vmatpush3.bf16.msra.mxu0 %v724_v1 }
  0x51   :  { %550 = vmatprep.subr.bf16.mxu1 %v723_v0  ;;  %586 = vmatprep.subr.bf16.mxu0 %v723_v0 }
  0x54   :  { %551 = vmatpush3.bf16.msra.mxu1 %v724_v1  ;;  %587 = vmatpush3.bf16.msra.mxu0 %v724_v1 }
  0x55   :  { %552 = vmatprep.subr.bf16.mxu1 %v723_v0  ;;  %588 = vmatprep.subr.bf16.mxu0 %v723_v0 }
  0x58   :  { %553 = vmatpush3.bf16.msra.mxu1 %v724_v1  ;;  %589 = vmatpush3.bf16.msra.mxu0 %v724_v1 }
  0x59   :  { %554 = vmatprep.subr.bf16.mxu1 %v723_v0  ;;  %590 = vmatprep.subr.bf16.mxu0 %v723_v0 }
  0x5c   :  { %555 = vmatpush3.bf16.msra.mxu1 %v796_v14  ;;  %591 = vmatpush3.bf16.msra.mxu0 %v796_v14 }
  0x5d   :  { %560 = vmatprep.subr.bf16.mxu1 %v723_v0  ;;  %596 = vmatprep.subr.bf16.mxu0 %v723_v0 }
  0x5f   :  { %557 = vmatmul.mubr.msk.bf16.vlgmr.msra.gmra.mrb[4].mxu1 %vm54_vm3, %v157_v32  ;;  %593 = vmatmul.mubr.msk.bf16.vlgmr.msra.gmra.mrb[4].mxu0 %vm54_vm3, %v253_v33 }
  0x60   :  { %561 = vmatpush3.bf16.msra.mxu1 %v724_v1  ;;  %597 = vmatpush3.bf16.msra.mxu0 %v724_v1 }
  0x61   :  { %562 = vmatprep.subr.bf16.mxu1 %v723_v0  ;;  %598 = vmatprep.subr.bf16.mxu0 %v723_v0 }
  0x62   :  { %574 = vmatprep.mubr.msk.bf16.mxu1 %vm725_vm0, %v723_v0  ;;  %610 = vmatprep.mubr.msk.bf16.mxu0 %vm725_vm0, %v723_v0 }
  0x64   :  { %563 = vmatpush3.bf16.msra.mxu1 %v724_v1  ;;  %599 = vmatpush3.bf16.msra.mxu0 %v724_v1 }
  0x65   :  { %564 = vmatprep.subr.bf16.mxu1 %v723_v0  ;;  %600 = vmatprep.subr.bf16.mxu0 %v723_v0 }
  0x68   :  { %565 = vmatpush3.bf16.msra.mxu1 %v724_v1  ;;  %601 = vmatpush3.bf16.msra.mxu0 %v724_v1 }
  0x69   :  { %566 = vmatprep.subr.bf16.mxu1 %v723_v0  ;;  %602 = vmatprep.subr.bf16.mxu0 %v723_v0 }
  0x6c   :  { %567 = vmatpush3.bf16.msra.mxu1 %v724_v1  ;;  %603 = vmatpush3.bf16.msra.mxu0 %v724_v1 }
  0x6d   :  { %568 = vmatprep.subr.bf16.mxu1 %v723_v0  ;;  %604 = vmatprep.subr.bf16.mxu0 %v723_v0 }
  0x70   :  { %569 = vmatpush3.bf16.msra.mxu1 %v724_v1  ;;  %605 = vmatpush3.bf16.msra.mxu0 %v724_v1 }
  0x71   :  { %570 = vmatprep.subr.bf16.mxu1 %v723_v0  ;;  %606 = vmatprep.subr.bf16.mxu0 %v723_v0 }
  0x74   :  { %571 = vmatpush3.bf16.msra.mxu1 %v724_v1  ;;  %607 = vmatpush3.bf16.msra.mxu0 %v724_v1 }
  0x75   :  { %572 = vmatprep.subr.bf16.mxu1 %v723_v0  ;;  %608 = vmatprep.subr.bf16.mxu0 %v723_v0 }
  0x78   :  { %573 = vmatpush3.bf16.msra.mxu1 %v796_v14  ;;  %609 = vmatpush3.bf16.msra.mxu0 %v796_v14 }
  0x7b   :  { %575 = vmatmul.mubr.msk.bf16.vlgmr.msra.gmra.mrb[4].mxu1 %vm54_vm3, %v152_v22  ;;  %611 = vmatmul.mubr.msk.bf16.vlgmr.msra.gmra.mrb[4].mxu0 %vm54_vm3, %v248_v23 }
 0x116   :  { %v99_v35 = vpop.f32.mrb[0].mxu1  ;;  %v143_v36 = vpop.f32.mrb[0].mxu0 }
 0x117   :  { %v144_v37 = vadd.f32 %v143_v36, %v99_v35  ;;  %v522_v38 = vpop.f32.mrb[1].mxu1  ;;  %v540_v39 = vpop.f32.mrb[1].mxu0 }
 0x118   :  { %v102_v40 = vpop.f32.mrb[2].mxu1  ;;  %v146_v41 = vpop.f32.mrb[2].mxu0 }
 0x119   :  { %v147_v42 = vadd.f32 %v146_v41, %v102_v40  ;;  %v523_v43 = vpop.f32.mrb[3].mxu1  ;;  %v541_v44 = vpop.f32.mrb[3].mxu0  ;;  %635 = vrsqrt.f32 %v144_v37 }
 0x11b   :  { %637 = vrsqrt.f32 %v147_v42 }
 0x123   :  { %v636_v45 = vpop.eup %635 }
 0x125   :  { %v638_v51 = vpop.eup %637 }
 0x14e   :  { %v239_v46 = vpop.f32.mrb[4].mxu1  ;;  %v335_v47 = vpop.f32.mrb[4].mxu0 }
 0x14f   :  { %639 = vrsqrt.f32 %v239_v46  ;;  %v344_v48 = vmul.f32 %v636_v45, %v335_v47  ;;  %v576_v49 = vpop.f32.mrb[5].mxu1  ;;  %v612_v50 = vpop.f32.mrb[5].mxu0 }
 0x150   :  { %v242_v52 = vpop.f32.mrb[6].mxu1  ;;  %v338_v53 = vpop.f32.mrb[6].mxu0  ;;  %v418_v49 = vlaneseq }
 0x151   :  { %641 = vrsqrt.f32 %v242_v52  ;;  %v345_v54 = vmul.f32 %v638_v51, %v338_v53  ;;  %v577_v55 = vpop.f32.mrb[7].mxu1  ;;  %v613_v56 = vpop.f32.mrb[7].mxu0 }
 0x152   :  { %v419_v50 = vand.u32 127, %v418_v49  ;;  %v421_v51 = vshrl.u32 %v418_v49, 7 }
 0x154   :  { %v424_v52 = vadd.s32 4294967288, %v419_v50 }
 0x156   :  { %v427_v55 = vsub.s32 %v424_v52, %v421_v51 }
 0x159   :  { %v640_v57 = vpop.eup %639 }
 0x15a   :  { %v348_v58 = vmul.f32 %v640_v57, %v344_v48 }
 0x15b   :  { %v642_v59 = vpop.eup %641 }
 0x15c   :  { %v456_v60 = vclamps-f32 %v348_v58, 1.0  ;;  %v349_v61 = vmul.f32 %v642_v59, %v345_v54  ;;  %v422_v54 = vsub.s32 %v419_v50, %v421_v51 }
 0x15e   :  { %v354_v62 = vand.u32 2147483647, %v456_v60  ;;  %v457_v63 = vclamps-f32 %v349_v61, 1.0  ;;  %vm404_vm8 = vcmp.lt.f32.partialorder %v456_v60, 0.0 }
 0x160   :  { %v355_v0 = vand.u32 2147483647, %v457_v63  ;;  %v356_v1 = vmul.f32 -0.0012624911, %v354_v62  ;;  %v384_v2 = vsub.f32 1.0, %v354_v62  ;;  %vm405_vm9 = vcmp.lt.f32.partialorder %v457_v63, 0.0 }
 0x162   :  { %v358_v3 = vadd.f32 0.00667009, %v356_v1  ;;  %v357_v4 = vmul.f32 -0.0012624911, %v355_v0  ;;  %v385_v5 = vsub.f32 1.0, %v355_v0  ;;  %v386_v6 = vmax.f32 %v384_v2, 0.0 }
 0x164   :  { %v360_v7 = vmul.f32 %v358_v3, %v354_v62  ;;  %v359_v8 = vadd.f32 0.00667009, %v357_v4  ;;  %v387_v10 = vmax.f32 %v385_v5, 0.0  ;;  %643 = vrsqrt.f32 %v386_v6 }
 0x165   :  { %vm390_vm4 = vcmp.eq.f32.partialorder %v386_v6, inf  ;;  %v393_v34 = vand.u32 2147483648, %v386_v6  ;;  %vm392_vm5 = vcmp.eq.f32.partialorder %v386_v6, 0.0 }
 0x166   :  { %v362_v9 = vadd.f32 -0.017088126, %v360_v7  ;;  %v361_v11 = vmul.f32 %v359_v8, %v355_v0  ;;  %645 = vrsqrt.f32 %v387_v10  ;;  %vm397_vm6 = vcmp.eq.f32.partialorder %v387_v10, inf }
 0x167   :  { %v400_v41 = vand.u32 2147483648, %v387_v10  ;;  %vm399_vm7 = vcmp.eq.f32.partialorder %v387_v10, 0.0 }
 0x168   :  { %v364_v12 = vmul.f32 %v362_v9, %v354_v62  ;;  %v363_v13 = vadd.f32 -0.017088126, %v361_v11 }
 0x16a   :  { %v366_v14 = vadd.f32 0.03089188, %v364_v12  ;;  %v365_v15 = vmul.f32 %v363_v13, %v355_v0 }
 0x16c   :  { %v368_v16 = vmul.f32 %v366_v14, %v354_v62  ;;  %v367_v17 = vadd.f32 0.03089188, %v365_v15 }
 0x16e   :  { %v370_v18 = vadd.f32 -0.050174303, %v368_v16  ;;  %v369_v19 = vmul.f32 %v367_v17, %v355_v0  ;;  %v644_v21 = vpop.eup %643 }
 0x16f   :  { %v389_v27 = vmul.f32 %v644_v21, %v386_v6 }
 0x170   :  { %v372_v20 = vmul.f32 %v370_v18, %v354_v62  ;;  %v371_v22 = vadd.f32 -0.050174303, %v369_v19  ;;  %v646_v25 = vpop.eup %645 }
 0x171   :  { %v396_v31 = vmul.f32 %v646_v25, %v387_v10  ;;  %v391_v33 = vsel %vm390_vm4, %v386_v6, %v389_v27 }
 0x172   :  { %v374_v23 = vadd.f32 0.08897899, %v372_v20  ;;  %v373_v24 = vmul.f32 %v371_v22, %v355_v0  ;;  %v394_v37 = vsel %vm392_vm5, %v393_v34, %v391_v33 }
 0x173   :  { %v398_v39 = vsel %vm397_vm6, %v387_v10, %v396_v31 }
 0x174   :  { %v376_v26 = vmul.f32 %v374_v23, %v354_v62  ;;  %v375_v28 = vadd.f32 0.08897899, %v373_v24  ;;  %v401_v44 = vsel %vm399_vm7, %v400_v41, %v398_v39 }
 0x176   :  { %v378_v29 = vadd.f32 -0.2145988, %v376_v26  ;;  %v377_v30 = vmul.f32 %v375_v28, %v355_v0 }
 0x178   :  { %v380_v32 = vmul.f32 %v378_v29, %v354_v62  ;;  %v379_v35 = vadd.f32 -0.2145988, %v377_v30 }
 0x17a   :  { %v382_v36 = vadd.f32 1.5707963, %v380_v32  ;;  %v381_v38 = vmul.f32 %v379_v35, %v355_v0 }
 0x17c   :  { %v402_v40 = vmul.f32 %v394_v37, %v382_v36  ;;  %v383_v42 = vadd.f32 1.5707963, %v381_v38 }
 0x17e   :  { %v406_v43 = vsub.f32 3.1415927, %v402_v40  ;;  %v403_v45 = vmul.f32 %v401_v44, %v383_v42 }
 0x180   :  { %v408_v46 = vsel %vm404_vm8, %v406_v43, %v402_v40  ;;  %v407_v47 = vsub.f32 3.1415927, %v403_v45 }
 0x181   :  { %413 = vperm.xlu0 %634, %v408_v46  }
 0x182   :  { %v409_v48 = vsel %vm405_vm9, %v407_v47, %v403_v45 }
 0x185   :  { %416 = vperm.xlu0 %634, %v409_v48  }
 0x200   :  { %v414_v53 = vpop.permute.xlu0 %413 }
 0x201   :  { %v423_v57 = vrot.slane %v414_v53, %v422_v54 }
 0x204   :  { %v417_v56 = vpop.permute.xlu0 %416 }
 0x205   :  { %v428_v58 = vrot.slane %v417_v56, %v427_v55 }
 0x207   :  { %v430_v59 = vsel %vm429_vm10, %v428_v58, %v423_v57 }
 0x208   :  { %433 = vst.msk [vmem:[#allocation7] sm:$0x1] %vm432_vm11, %v430_v59 }
 0x209   :  { %702 = shalt.err (!%p699_p6)
}
 0x20a   :  { %s703_s11 = scalar_lea.hbm %s886_s2, 16 }
 0x20b   :  { %p704_p7 = scmp.ne.s32.totalorder %s886_s2, %s703_s11  ;;  %p707_p8 = scmp.lt.u32.totalorder %s703_s11, %s886_s2 }
 0x20d   :  { %p709_p9 = pnand %p707_p8, %p704_p7 }
 0x20f   :  { %712 = shalt.err (!%p709_p9)
}
 0x210   :  { %443 = dma.vmem_to_hbm [thread:$0]  %s441_s6, 16, %s886_s2, [#allocation4]  }
 0x211   :  { %717 = dma.done.wait [#allocation4], 16  }
 0x212   :  { %718 = vsyncadd [#allocation4], 4294967280 }
 0x213   :  { %447 = vsyncpa [#allocation3], 1 }
 0x214   :  { %448 = vsyncpa [#allocation6], 1 }
 0x215   :  { %449 = vsyncpa [#allocation4], 1 }

</bundles_post_ra>
